<compile_context>
chip_gen: v6e
topology: v6e:2x2x1
jax: 0.10.0
libtpu: 0.0.40
codegen_flags: <defaults>
</compile_context>

<pallas_src>
import jax
import jax.numpy as jnp
from jax import lax
from jax.experimental import pallas as pl
from jax.experimental.pallas import tpu as pltpu

EPS = 1e-5
_LANE = 128
_GATHER_ROWS = 8                    # rows gathered per grid step (sublane-dense output)
_RESIDENT_TABLE_BYTES = 8 << 20     # resident-table fast path threshold (safe on v7x's 64 MiB VMEM)
_FEATURE_TILE_BUDGET = 16 << 20     # target total VMEM footprint of one pipelined block set


# ----------------------------------------------------------------------------
# Tiling / VMEM helpers
# ----------------------------------------------------------------------------
def _pick_feature_tile(total_features, per_column_bytes, budget=_FEATURE_TILE_BUDGET):
    """Largest lane-aligned feature tile whose pipelined footprint fits `budget`,
    preferring >= 2 tiles so the 'parallel' feature axis can split across v7x's
    two TensorCores."""
    if total_features <= _LANE or total_features % _LANE:
        return total_features
    max_ft = max(_LANE, (budget // max(1, per_column_bytes)) // _LANE * _LANE)
    ft = min(max_ft, total_features)
    if ft >= total_features:
        half = ((total_features // 2 + _LANE - 1) // _LANE) * _LANE
        ft = min(max(half, _LANE), total_features)
    return ft


def _vmem_limit(block_bytes):
    """Raise the scoped-VMEM limit when the pipelined block set exceeds the
    tightest default (v5e: 16 MiB).  Returns None when defaults are plenty."""
    needed = block_bytes + (2 << 20)
    if needed <= (12 << 20):
        return None
    # TODO(synk): for batches so large that even a 128-lane tile exceeds ~60 MiB,
    # switch the BN to a B-tiled streamed (sum, sum_sq) two-pass formulation.
    return int(min(needed * 3 // 2, 60 << 20))


# ----------------------------------------------------------------------------
# Kernel 1: embedding gather (MobiusEmbedding.forward)
# ----------------------------------------------------------------------------
def _gather_resident_kernel(idx_ref, table_ref, o_ref):
    # table_ref: full (E, GD) table resident in VMEM (same block every step).
    # Gather _GATHER_ROWS rows per step -> one dense (8, GD) output store.
    base = pl.program_id(0) * _GATHER_ROWS
    rows = [table_ref[pl.ds(idx_ref[base + r], 1), :] for r in range(_GATHER_ROWS)]
    o_ref[...] = jnp.concatenate(rows, axis=0)


def _gather_rows_resident(idx, table):
    B = idx.shape[0]
    E, GD = table.shape
    Bp = ((B + _GATHER_ROWS - 1) // _GATHER_ROWS) * _GATHER_ROWS
    idx_p = idx if Bp == B else jnp.pad(idx, (0, Bp - B))   # pad with valid row 0
    out = pl.pallas_call(
        _gather_resident_kernel,
        out_shape=jax.ShapeDtypeStruct((Bp, GD), table.dtype),
        grid_spec=pltpu.PrefetchScalarGridSpec(
            num_scalar_prefetch=1,               # idx lands in SMEM before the grid
            grid=(Bp // _GATHER_ROWS,),
            in_specs=[
                # Whole table, identical block every step -> fetched once, stays in VMEM.
                pl.BlockSpec((E, GD), lambda b, idx_ref: (0, 0)),
            ],
            out_specs=pl.BlockSpec((_GATHER_ROWS, GD), lambda b, idx_ref: (b, 0)),
        ),
        compiler_params=pltpu.CompilerParams(
            dimension_semantics=("parallel",)),   # distinct output blocks -> megacore split
    )(idx_p, table)
    return out if Bp == B else out[:B]


def _gather_row_kernel(idx_ref, table_row_ref, o_ref):
    del idx_ref                                   # consumed by the index_map only
    o_ref[...] = table_row_ref[...]


def _gather_rows_streaming(idx, table):
    # Fallback for tables too large to keep resident in VMEM: data-dependent
    # per-row DMA, deeper pipelining to hide the small-row DMA latency.
    # TODO(synk): batch R rows per step via memory_space=pl.ANY + manual
    # make_async_copy ring if this path ever becomes hot.
    B = idx.shape[0]
    E, GD = table.shape
    return pl.pallas_call(
        _gather_row_kernel,
        out_shape=jax.ShapeDtypeStruct((B, GD), table.dtype),
        grid_spec=pltpu.PrefetchScalarGridSpec(
            num_scalar_prefetch=1,
            grid=(B,),
            in_specs=[
                pl.BlockSpec((1, GD), lambda b, idx_ref: (idx_ref[b], 0),
                             pipeline_mode=pl.Buffered(3)),
            ],
            out_specs=pl.BlockSpec((1, GD), lambda b, idx_ref: (b, 0)),
        ),
        compiler_params=pltpu.CompilerParams(
            dimension_semantics=("parallel",)),
    )(idx, table)


def mobius_embedding_lookup(idx, table):
    """idx: (B,) int; table: (num_entities, G*D).  Returns (B, G*D)."""
    E = table.shape[0]
    idx = jnp.clip(idx.astype(jnp.int32), 0, E - 1)   # guard data-dependent DMA/slice
    if table.size * table.dtype.itemsize <= _RESIDENT_TABLE_BYTES:
        return _gather_rows_resident(idx, table)
    return _gather_rows_streaming(idx, table)


# ----------------------------------------------------------------------------
# Kernel 2: fused, lane-dense batched BatchNorm1d (MobiusBatchNorm1d.forward)
# ----------------------------------------------------------------------------
def _bn_fused_kernel(x_ref, gamma_ref, beta_ref, o_ref):
    # x_ref / o_ref: (B, Ft); gamma_ref / beta_ref: (1, Ft).
    # Each column is an independent feature -> per-column stats over axis 0 are
    # exactly the G independent BatchNorm1d instances (biased var, eps=1e-5).
    x = x_ref[...].astype(jnp.float32)
    mean = jnp.mean(x, axis=0, keepdims=True)
    var = jnp.maximum(jnp.mean(x * x, axis=0, keepdims=True) - mean * mean, 0.0)
    scale = lax.rsqrt(var + EPS) * gamma_ref[...].astype(jnp.float32)   # EUP rsqrt
    shift = beta_ref[...].astype(jnp.float32) - mean * scale
    o_ref[...] = (x * scale + shift).astype(o_ref.dtype)               # 1 mul + 1 add / elem


def fused_batchnorm1d(x, gamma, beta):
    """x: (B, G*D); gamma, beta: (1, G*D).  Independent BatchNorm1d per column."""
    B, GD = x.shape
    itemsize = x.dtype.itemsize
    # per column: 2x in + 2x out (double-buffered) + ~3 f32 in-kernel temps
    per_col = B * (4 * itemsize + 3 * 4)
    ft = _pick_feature_tile(GD, per_col)
    limit = _vmem_limit(per_col * ft)
    return pl.pallas_call(
        _bn_fused_kernel,
        out_shape=jax.ShapeDtypeStruct((B, GD), x.dtype),
        grid_spec=pltpu.PrefetchScalarGridSpec(
            num_scalar_prefetch=0,
            grid=(pl.cdiv(GD, ft),),
            in_specs=[
                pl.BlockSpec((B, ft), lambda j: (0, j)),
                pl.BlockSpec((1, ft), lambda j: (0, j)),
                pl.BlockSpec((1, ft), lambda j: (0, j)),
            ],
            out_specs=pl.BlockSpec((B, ft), lambda j: (0, j)),
        ),
        compiler_params=pltpu.CompilerParams(
            dimension_semantics=("parallel",), vmem_limit_bytes=limit),
    )(x, gamma, beta)


# ----------------------------------------------------------------------------
# Kernel 3: fully fused gather + BatchNorm (single HBM write of the result)
# ----------------------------------------------------------------------------
def _embed_bn_kernel(idx_ref, table_ref, gamma_ref, beta_ref, o_ref):
    # table_ref: (E, Ft) feature slice of the table; o_ref: (B, Ft).
    B = o_ref.shape[0]

    def gather_row(b, carry):
        o_ref[pl.ds(b, 1), :] = table_ref[pl.ds(idx_ref[b], 1), :]
        return carry

    lax.fori_loop(0, B, gather_row, 0)            # gather straight into the output block

    x = o_ref[...].astype(jnp.float32)
    mean = jnp.mean(x, axis=0, keepdims=True)
    var = jnp.maximum(jnp.mean(x * x, axis=0, keepdims=True) - mean * mean, 0.0)
    scale = lax.rsqrt(var + EPS) * gamma_ref[...].astype(jnp.float32)
    shift = beta_ref[...].astype(jnp.float32) - mean * scale
    o_ref[...] = (x * scale + shift).astype(o_ref.dtype)


def fused_embedding_batchnorm(idx, table, gamma, beta):
    """Gather rows idx from `table` and apply per-column BatchNorm in one kernel."""
    B = idx.shape[0]
    E, GD = table.shape
    idx = jnp.clip(idx.astype(jnp.int32), 0, E - 1)
    itemsize = table.dtype.itemsize
    # per column: 2x table slice (double-buffered) + 2x out + ~3 f32 temps
    per_col = 2 * E * itemsize + B * (2 * itemsize + 3 * 4)
    ft = _pick_feature_tile(GD, per_col)
    limit = _vmem_limit(per_col * ft)
    return pl.pallas_call(
        _embed_bn_kernel,
        out_shape=jax.ShapeDtypeStruct((B, GD), table.dtype),
        grid_spec=pltpu.PrefetchScalarGridSpec(
            num_scalar_prefetch=1,
            grid=(pl.cdiv(GD, ft),),
            in_specs=[
                pl.BlockSpec((E, ft), lambda j, idx_ref: (0, j)),
                pl.BlockSpec((1, ft), lambda j, idx_ref: (0, j)),
                pl.BlockSpec((1, ft), lambda j, idx_ref: (0, j)),
            ],
            out_specs=pl.BlockSpec((B, ft), lambda j, idx_ref: (0, j)),
        ),
        compiler_params=pltpu.CompilerParams(
            dimension_semantics=("parallel",), vmem_limit_bytes=limit),
    )(idx, table, gamma, beta)


# ----------------------------------------------------------------------------
# Module wrappers (JAX ports of the PyTorch modules, forward-pass only)
# ----------------------------------------------------------------------------
def _split_nested(y, D, num_channels, norm_num_channels):
    out, g = [], 0
    for _ in range(num_channels):
        parts = []
        for _ in range(norm_num_channels):
            parts.append(y[:, g * D:(g + 1) * D])
            g += 1
        out.append(tuple(parts))
    return tuple(out)


class MobiusEmbedding:
    """num_channels ComplexEmbeddings, each with norm_num_channels tables,
    stored as ONE lane-dense concatenated table (num_entities, G*D)."""

    def __init__(self, num_entities, embedding_dim, num_channels,
                 norm_num_channels=2, key=None):
        self.num_entities = num_entities
        self.embedding_dim = embedding_dim
        self.num_channels = num_channels
        self.norm_num_channels = norm_num_channels
        G = num_channels * norm_num_channels
        if key is None:
            key = jax.random.PRNGKey(0)
        self.table = jax.random.normal(
            key, (num_entities, G * embedding_dim), jnp.float32)
        # TODO(synk): init()/get_embeddings()/get_cat_embedding() helpers of the
        # PyTorch module are not modeled (not part of the forward pass).

    def __call__(self, idx):
        y = mobius_embedding_lookup(idx, self.table)        # (B, G*D)
        return _split_nested(y, self.embedding_dim,
                             self.num_channels, self.norm_num_channels)


class MobiusBatchNorm1d:
    """Training-mode forward of MobiusBatchNorm1d (nested-tuple BatchNorm1d)."""

    def __init__(self, embedding_dim, num_channels, norm_num_channels=2, key=None):
        self.embedding_dim = embedding_dim
        self.num_channels = num_channels
        self.norm_num_channels = norm_num_channels
        G = num_channels * norm_num_channels
        if key is None:
            self.gamma = jnp.ones((1, G * embedding_dim), jnp.float32)
            self.beta = jnp.zeros((1, G * embedding_dim), jnp.float32)
        else:
            kg, kb = jax.random.split(key)
            self.gamma = 1.0 + 0.1 * jax.random.normal(
                kg, (1, G * embedding_dim), jnp.float32)
            self.beta = 0.1 * jax.random.normal(
                kb, (1, G * embedding_dim), jnp.float32)
        # TODO(synk): running_mean/running_var buffer updates and eval-mode
        # statistics (stateful BatchNorm1d behavior) are not modeled.

    def __call__(self, complex_numbers):
        flat = [t for cn in complex_numbers for t in cn]
        x = jnp.concatenate(flat, axis=1)                    # (B, G*D) lane-dense
        y = fused_batchnorm1d(x, self.gamma, self.beta)
        return _split_nested(y, self.embedding_dim,
                             self.num_channels, self.norm_num_channels)


def mobius_embedding_batchnorm(idx, emb: MobiusEmbedding, bn: MobiusBatchNorm1d):
    """Fused fast path: MobiusBatchNorm1d(MobiusEmbedding(idx)) in one kernel
    (no intermediate HBM round trip / tuple slice-concat)."""
    y = fused_embedding_batchnorm(idx, emb.table, bn.gamma, bn.beta)
    return _split_nested(y, emb.embedding_dim,
                         emb.num_channels, emb.norm_num_channels)


# ----------------------------------------------------------------------------
# Demo / correctness check
# ----------------------------------------------------------------------------
if __name__ == "__main__":
    batch = 8
    num_entities = 16
    embedding_dim = 32
    num_channels = 4
    norm_num_channels = 2
    G = num_channels * norm_num_channels

    key = jax.random.PRNGKey(0)
    k_emb, k_bn, k_idx = jax.random.split(key, 3)

    emb = MobiusEmbedding(num_entities, embedding_dim, num_channels,
                          norm_num_channels, key=k_emb)
    bn = MobiusBatchNorm1d(embedding_dim, num_channels,
                           norm_num_channels, key=k_bn)

    idx = jax.random.randint(k_idx, (batch,), 0, num_entities, dtype=jnp.int32)

    embedded = emb(idx)                              # gather kernel (resident path)
    normalized = bn(embedded)                        # standalone BN kernel
    fused = mobius_embedding_batchnorm(idx, emb, bn)  # fully fused kernel
    embedded = jax.block_until_ready(embedded)
    normalized = jax.block_until_ready(normalized)
    fused = jax.block_until_ready(fused)

    # Pure-JAX references.
    gathered_ref = jnp.take(emb.table, idx, axis=0)                 # (B, G*D)
    mean = jnp.mean(gathered_ref, axis=0, keepdims=True)
    var = jnp.mean((gathered_ref - mean) ** 2, axis=0, keepdims=True)
    bn_ref = (gathered_ref - mean) / jnp.sqrt(var + EPS) * bn.gamma + bn.beta

    D = embedding_dim
    g = 0
    for c in range(num_channels):
        for j in range(norm_num_channels):
            sl = slice(g * D, (g + 1) * D)
            assert embedded[c][j].shape == (batch, D)
            emb_err = float(jnp.max(jnp.abs(embedded[c][j] - gathered_ref[:, sl])))
            bn_err = float(jnp.max(jnp.abs(normalized[c][j] - bn_ref[:, sl])))
            fus_err = float(jnp.max(jnp.abs(fused[c][j] - bn_ref[:, sl])))
            assert emb_err < 1e-6, f"embedding mismatch at ({c},{j}): {emb_err}"
            assert bn_err < 1e-4, f"batchnorm mismatch at ({c},{j}): {bn_err}"
            assert fus_err < 1e-4, f"fused mismatch at ({c},{j}): {fus_err}"
            g += 1

    print("KERNEL_OK")
</pallas_src>

<mosaic_0001>
module attributes {stable_mosaic.version = 11 : i64} {
  func.func @_gather_resident_kernel(%arg0: i32, %arg1: memref<8xi32, #tpu.memory_space<smem>>, %arg2: memref<16x256xf32, #tpu.memory_space<vmem>>, %arg3: memref<8x256xf32, #tpu.memory_space<vmem>>) attributes {dimension_semantics = [#tpu.dimension_semantics<parallel>], iteration_bounds = array<i64: 1>, scalar_prefetch = 1 : i64, scratch_operands = 0 : i64, tpu.core_type = #tpu.core_type<tc>, window_params = [{pipeline_mode = #tpu.pipeline_mode<synchronous>, transform_indices = @transform_0, window_bounds = array<i64: 16, 256>}, {transform_indices = @transform_1, window_bounds = array<i64: 8, 256>}]} {
    %c8_i32 = arith.constant 8 : i32
    %0 = arith.muli %arg0, %c8_i32 : i32
    %c0_i32 = arith.constant 0 : i32
    %1 = arith.addi %0, %c0_i32 : i32
    %2 = arith.index_cast %1 : i32 to index
    %3 = memref.load %arg1[%2] : memref<8xi32, #tpu.memory_space<smem>>
    %4 = arith.index_cast %3 : i32 to index
    %c0 = arith.constant 0 : index
    %5 = vector.load %arg2[%4, %c0] : memref<16x256xf32, #tpu.memory_space<vmem>>, vector<1x256xf32>
    %c1_i32 = arith.constant 1 : i32
    %6 = arith.addi %0, %c1_i32 : i32
    %7 = arith.index_cast %6 : i32 to index
    %8 = memref.load %arg1[%7] : memref<8xi32, #tpu.memory_space<smem>>
    %9 = arith.index_cast %8 : i32 to index
    %c0_0 = arith.constant 0 : index
    %10 = vector.load %arg2[%9, %c0_0] : memref<16x256xf32, #tpu.memory_space<vmem>>, vector<1x256xf32>
    %c2_i32 = arith.constant 2 : i32
    %11 = arith.addi %0, %c2_i32 : i32
    %12 = arith.index_cast %11 : i32 to index
    %13 = memref.load %arg1[%12] : memref<8xi32, #tpu.memory_space<smem>>
    %14 = arith.index_cast %13 : i32 to index
    %c0_1 = arith.constant 0 : index
    %15 = vector.load %arg2[%14, %c0_1] : memref<16x256xf32, #tpu.memory_space<vmem>>, vector<1x256xf32>
    %c3_i32 = arith.constant 3 : i32
    %16 = arith.addi %0, %c3_i32 : i32
    %17 = arith.index_cast %16 : i32 to index
    %18 = memref.load %arg1[%17] : memref<8xi32, #tpu.memory_space<smem>>
    %19 = arith.index_cast %18 : i32 to index
    %c0_2 = arith.constant 0 : index
    %20 = vector.load %arg2[%19, %c0_2] : memref<16x256xf32, #tpu.memory_space<vmem>>, vector<1x256xf32>
    %c4_i32 = arith.constant 4 : i32
    %21 = arith.addi %0, %c4_i32 : i32
    %22 = arith.index_cast %21 : i32 to index
    %23 = memref.load %arg1[%22] : memref<8xi32, #tpu.memory_space<smem>>
    %24 = arith.index_cast %23 : i32 to index
    %c0_3 = arith.constant 0 : index
    %25 = vector.load %arg2[%24, %c0_3] : memref<16x256xf32, #tpu.memory_space<vmem>>, vector<1x256xf32>
    %c5_i32 = arith.constant 5 : i32
    %26 = arith.addi %0, %c5_i32 : i32
    %27 = arith.index_cast %26 : i32 to index
    %28 = memref.load %arg1[%27] : memref<8xi32, #tpu.memory_space<smem>>
    %29 = arith.index_cast %28 : i32 to index
    %c0_4 = arith.constant 0 : index
    %30 = vector.load %arg2[%29, %c0_4] : memref<16x256xf32, #tpu.memory_space<vmem>>, vector<1x256xf32>
    %c6_i32 = arith.constant 6 : i32
    %31 = arith.addi %0, %c6_i32 : i32
    %32 = arith.index_cast %31 : i32 to index
    %33 = memref.load %arg1[%32] : memref<8xi32, #tpu.memory_space<smem>>
    %34 = arith.index_cast %33 : i32 to index
    %c0_5 = arith.constant 0 : index
    %35 = vector.load %arg2[%34, %c0_5] : memref<16x256xf32, #tpu.memory_space<vmem>>, vector<1x256xf32>
    %c7_i32 = arith.constant 7 : i32
    %36 = arith.addi %0, %c7_i32 : i32
    %37 = arith.index_cast %36 : i32 to index
    %38 = memref.load %arg1[%37] : memref<8xi32, #tpu.memory_space<smem>>
    %39 = arith.index_cast %38 : i32 to index
    %c0_6 = arith.constant 0 : index
    %40 = vector.load %arg2[%39, %c0_6] : memref<16x256xf32, #tpu.memory_space<vmem>>, vector<1x256xf32>
    %41 = tpu.concatenate %5, %10, %15, %20, %25, %30, %35, %40 in 0 : vector<1x256xf32>, vector<1x256xf32>, vector<1x256xf32>, vector<1x256xf32>, vector<1x256xf32>, vector<1x256xf32>, vector<1x256xf32>, vector<1x256xf32> -> vector<8x256xf32>
    %c0_7 = arith.constant 0 : index
    %c0_8 = arith.constant 0 : index
    %42 = vector.load %arg3[%c0_7, %c0_8] : memref<8x256xf32, #tpu.memory_space<vmem>>, vector<8x256xf32>
    tpu.vector_store %arg3[%c0_7, %c0_8], %41 {strides = array<i32>} : memref<8x256xf32, #tpu.memory_space<vmem>>, vector<8x256xf32>,
    return
  }
  func.func @transform_0(%arg0: i32, %arg1: memref<8xi32, #tpu.memory_space<smem>>) -> (i32, i32) {
    %c0_i32 = arith.constant 0 : i32
    %c0_i32_0 = arith.constant 0 : i32
    %c0_i32_1 = arith.constant 0 : i32
    return %c0_i32, %c0_i32_0 : i32, i32
  }
  func.func @transform_1(%arg0: i32, %arg1: memref<8xi32, #tpu.memory_space<smem>>) -> (i32, i32) {
    %c0_i32 = arith.constant 0 : i32
    %c0_i32_0 = arith.constant 0 : i32
    return %arg0, %c0_i32 : i32, i32
  }
}

</mosaic_0001>

<bundles_post_ra>
// kernel: tpu_custom_call.1
= control target key start
LH: loop header
LB: loop body
LE: loop exit
PB: predicated region body
PF: predicated region fallthrough
CT: control target
= control target key end

     0   :  { %s356_s9 = smov [#allocation3]   ;;  %s417_s0 = inlined_call_operand.hbm [shape: s32[8], index: 0, kind: input, shape index: {}]   ;;  %s418_s1 = inlined_call_operand.hbm [shape: f32[16,256], index: 1, kind: input, shape index: {}]   ;;  %s419_s2 = inlined_call_operand.hbm [shape: f32[8,256], index: 2, kind: output, shape index: {}]  }
   0x1   :  { %8 = dma.hbm_to_smem %s417_s0, 16, %s356_s9, [#allocation2] }
   0x2   :  { %350 = dma.done.wait [#allocation2], 16 }
   0x3   :  { %351 = vsyncadd [#allocation2], 4294967280 }
   0x4   :  { %10 = sfence }
   0x5   :  { %11 = vsyncpa [#allocation5], 0 }
   0x6   :  { %12 = vsyncpa [#allocation6], 0  ;;  %s357_s12 = smov [#allocation4]  }
   0x7   :  { %s18_s13 = sshll.u32 %s357_s12, 4  ;;  %s19_s13 = int_to_ptr.vmem [resolvable:$true] %s18_s13 }
   0x8   :  { %s318_s14 = scalar_lea.vmem %s19_s13, 512  ;;  %p323_p1 = scmp.lt.s32.totalorder %s19_s13, %s19_s13 }
   0x9   :  { %p319_p0 = scmp.ne.s32.totalorder %s19_s13, %s318_s14  ;;  %p324_p2 = scmp.lt.s32.totalorder %s318_s14, %s318_s14 }
   0xb   :  { %p325_p3 = por %p324_p2, %p323_p1 }
   0xd   :  { %p326_p4 = pnand %p325_p3, %p319_p0 }
   0xf   :  { %329 = shalt.err (!%p326_p4)
}
  0x10   :  { %s358_s15 = smov 256   ;;  %s359_s16 = smov 16  }
  0x11   :  { %24 = dma.hbm_to_vmem [thread:$0]  %s418_s1, 512, %s19_s13, [#allocation5], %s358_s15, %s358_s15, %s359_s16  }
  0x12   :  { %352 = dma.done.wait [#allocation5], 512  }
  0x13   :  { %353 = vsyncadd [#allocation5], 4294966784  ;;  %s29_s0 = sld [smem:[#allocation3]]  ;;  %v117_v0 = vlaneseq  ;;  %vm204_vm0 = vcmask 1040384   ;;  %vm207_vm1 = vcmask 1041408   ;;  %vm210_vm2 = vcmask 1042432  }
  0x14   :  { %s268_s19 = sld [smem:[#allocation3 + $0x1]]  ;;  %vm213_vm3 = vcmask 1043456   ;;  %vm216_vm4 = vcmask 1044480   ;;  %vm219_vm5 = vcmask 1045504   ;;  %vm222_vm6 = vcmask 1046528  }
  0x15   :  { %s271_s20 = sld [smem:[#allocation3 + $0x2]]  ;;  %v118_v1 = vshrl.u32 %v117_v0, 7 }
  0x16   :  { %s382_s21 = sld [smem:[#allocation3 + $0x3]] }
  0x17   :  { %s384_s22 = sld [smem:[#allocation3 + $0x4]]  ;;  %v388_v2 = vsub.s32 0, %v118_v1  ;;  %v390_v3 = vsub.s32 1, %v118_v1 }
  0x18   :  { %s386_s23 = sld [smem:[#allocation3 + $0x5]] }
  0x19   :  { %s30_s24 = sshra.s32 %s29_s0, 3  ;;  %s33_s25 = sand.u32 7, %s29_s0 }
  0x1a   :  { %s289_s26 = sshll.u32 %s30_s24, 4  ;;  %s41_s27 = sshra.s32 %s268_s19, 3 }
  0x1b   :  { %s36_s1 = sadd.s32 %s289_s26, %s33_s25  ;;  %s44_s28 = sand.u32 7, %s268_s19 }
  0x1c   :  { %s290_s29 = sshll.u32 %s41_s27, 4  ;;  %s52_s3 = sshra.s32 %s271_s20, 3 }
  0x1d   :  { %s47_s30 = sadd.s32 %s290_s29, %s44_s28  ;;  %s37_s4 = scalar_lea.vmem [#allocation4], %s36_s1 }
  0x1e   :  { %v38_v4 = vld [vmem:[%s37_s4] ss:$8 sm:$0x3]  ;;  %s55_s5 = sand.u32 7, %s271_s20  ;;  %s48_s6 = scalar_lea.vmem [#allocation4], %s47_s30 }
  0x1f   :  { %v49_v5 = vld [vmem:[%s48_s6] ss:$8 sm:$0x3]  ;;  %s291_s7 = sshll.u32 %s52_s3, 4  ;;  %s63_s8 = sshra.s32 %s382_s21, 3  ;;  %v120_v6 = vrot.slane %v38_v4, %v388_v2  ;;  %v124_v8 = vrot.slane %v38_v4, %v390_v3 }
  0x20   :  { %s58_s9 = sadd.s32 %s291_s7, %s55_s5  ;;  %s66_s10 = sand.u32 7, %s382_s21  ;;  %v131_v7 = vrot.slane %v49_v5, %v388_v2  ;;  %v135_v9 = vrot.slane %v49_v5, %v390_v3 }
  0x21   :  { %s292_s11 = sshll.u32 %s63_s8, 4  ;;  %s59_s12 = scalar_lea.vmem [#allocation4], %s58_s9 }
  0x22   :  { %v60_v10 = vld [vmem:[%s59_s12] ss:$8 sm:$0x3]  ;;  %s69_s13 = sadd.s32 %s292_s11, %s66_s10  ;;  %s74_s14 = sshra.s32 %s384_s22, 3  ;;  %v205_v14 = vsel %vm204_vm0, %v120_v6, %v131_v7  ;;  %v206_v15 = vsel %vm204_vm0, %v124_v8, %v135_v9 }
  0x23   :  { %s77_s15 = sand.u32 7, %s384_s22  ;;  %s70_s16 = scalar_lea.vmem [#allocation4], %s69_s13  ;;  %v142_v12 = vrot.slane %v60_v10, %v388_v2  ;;  %v146_v13 = vrot.slane %v60_v10, %v390_v3 }
  0x24   :  { %v71_v11 = vld [vmem:[%s70_s16] ss:$8 sm:$0x3]  ;;  %s293_s17 = sshll.u32 %s74_s14, 4  ;;  %s85_s18 = sshra.s32 %s386_s23, 3 }
  0x25   :  { %s80_s0 = sadd.s32 %s293_s17, %s77_s15  ;;  %s88_s19 = sand.u32 7, %s386_s23  ;;  %v153_v17 = vrot.slane %v71_v11, %v388_v2  ;;  %v157_v18 = vrot.slane %v71_v11, %v390_v3  ;;  %v208_v19 = vsel %vm207_vm1, %v205_v14, %v142_v12  ;;  %v209_v20 = vsel %vm207_vm1, %v206_v15, %v146_v13 }
  0x26   :  { %s294_s20 = sshll.u32 %s85_s18, 4  ;;  %s81_s21 = scalar_lea.vmem [#allocation4], %s80_s0 }
  0x27   :  { %v82_v16 = vld [vmem:[%s81_s21] ss:$8 sm:$0x3]  ;;  %s91_s24 = sadd.s32 %s294_s20, %s88_s19  ;;  %s283_s25 = sld [smem:[#allocation3 + $0x6]]  ;;  %v211_v24 = vsel %vm210_vm2, %v208_v19, %v153_v17  ;;  %v212_v25 = vsel %vm210_vm2, %v209_v20, %v157_v18 }
  0x28   :  { %s286_s22 = sld [smem:[#allocation3 + $0x7]]  ;;  %s92_s26 = scalar_lea.vmem [#allocation4], %s91_s24  ;;  %v164_v22 = vrot.slane %v82_v16, %v388_v2  ;;  %v168_v23 = vrot.slane %v82_v16, %v390_v3 }
  0x29   :  { %v93_v21 = vld [vmem:[%s92_s26] ss:$8 sm:$0x3]  ;;  %s360_s6 = smov [#allocation7]  }
  0x2a   :  { %v175_v26 = vrot.slane %v93_v21, %v388_v2  ;;  %v179_v27 = vrot.slane %v93_v21, %v390_v3  ;;  %v214_v28 = vsel %vm213_vm3, %v211_v24, %v164_v22  ;;  %v215_v29 = vsel %vm213_vm3, %v212_v25, %v168_v23  ;;  %s233_s7 = sshll.u32 %s360_s6, 4  ;;  %s234_s7 = int_to_ptr.vmem [resolvable:$true] %s233_s7 }
  0x2b   :  { %s330_s9 = scalar_lea.vmem %s234_s7, 256  ;;  %p335_p6 = scmp.lt.s32.totalorder %s234_s7, %s234_s7 }
  0x2c   :  { %v217_v31 = vsel %vm216_vm4, %v214_v28, %v175_v26  ;;  %v218_v32 = vsel %vm216_vm4, %v215_v29, %v179_v27  ;;  %p331_p5 = scmp.ne.s32.totalorder %s234_s7, %s330_s9  ;;  %p336_p7 = scmp.lt.s32.totalorder %s330_s9, %s330_s9 }
  0x2d   :  { %s96_s23 = sshra.s32 %s283_s25, 3  ;;  %s99_s27 = sand.u32 7, %s283_s25 }
  0x2e   :  { %s295_s1 = sshll.u32 %s96_s23, 4  ;;  %s107_s28 = sshra.s32 %s286_s22, 3 }
  0x2f   :  { %s102_s29 = sadd.s32 %s295_s1, %s99_s27  ;;  %s110_s30 = sand.u32 7, %s286_s22 }
  0x30   :  { %s296_s3 = sshll.u32 %s107_s28, 4  ;;  %s103_s4 = scalar_lea.vmem [#allocation4], %s102_s29 }
  0x31   :  { %v104_v30 = vld [vmem:[%s103_s4] ss:$8 sm:$0x3]  ;;  %s113_s5 = sadd.s32 %s296_s3, %s110_s30  ;;  %p337_p8 = por %p336_p7, %p335_p6 }
  0x32   :  { %v186_v33 = vrot.slane %v104_v30, %v388_v2  ;;  %v190_v34 = vrot.slane %v104_v30, %v390_v3  ;;  %s114_s8 = scalar_lea.vmem [#allocation4], %s113_s5 }
  0x33   :  { %v115_v35 = vld [vmem:[%s114_s8] ss:$8 sm:$0x3]  ;;  %p338_p9 = pnand %p337_p8, %p331_p5 }
  0x34   :  { %v197_v36 = vrot.slane %v115_v35, %v388_v2  ;;  %v220_v37 = vsel %vm219_vm5, %v217_v31, %v186_v33  ;;  %v201_v38 = vrot.slane %v115_v35, %v390_v3  ;;  %v221_v39 = vsel %vm219_vm5, %v218_v32, %v190_v34 }
  0x36   :  { %v223_v40 = vsel %vm222_vm6, %v220_v37, %v197_v36  ;;  %v224_v41 = vsel %vm222_vm6, %v221_v39, %v201_v38 }
  0x37   :  { %225 = vst [vmem:[#allocation7] sm:$0xff] %v223_v40  ;;  %226 = vst [vmem:[#allocation7 + $0x8] sm:$0xff] %v224_v41 }
  0x38   :  { %341 = shalt.err (!%p338_p9)
}
  0x39   :  { %236 = dma.vmem_to_hbm [thread:$0]  %s234_s7, 256, %s419_s2, [#allocation6]  }
  0x3a   :  { %354 = dma.done.wait [#allocation6], 256  }
  0x3b   :  { %355 = vsyncadd [#allocation6], 4294967040 }
  0x3c   :  { %240 = vsyncpa [#allocation5], 1 }
  0x3d   :  { %241 = vsyncpa [#allocation6], 1 }

</bundles_post_ra>
